<compile_context>
chip_gen: v7x
topology: tpu7x:2x2x1
jax: 0.10.0
libtpu: 0.0.40
codegen_flags: <defaults>
</compile_context>

<pallas_src>
import jax
import jax.numpy as jnp
from jax.experimental import pallas as pl
from jax.experimental.pallas import tpu as pltpu


def _swish_kernel(beta_ref, x_ref, o_ref):
    # beta_ref: (1, 1) f32 scalar in SMEM; x_ref / o_ref: (tile_rows, LANE) in VMEM.
    beta = beta_ref[0, 0]
    x = x_ref[...].astype(jnp.float32)
    z = beta * x
    # sigmoid(z) == 0.5 * (tanh(0.5*z) + 1): a single EUP transcendental, no divide.
    sig = 0.5 * (jnp.tanh(0.5 * z) + 1.0)
    o_ref[...] = (x * sig).astype(o_ref.dtype)


def _choose_layout(n):
    """Pick the widest lane count with zero HBM-side padding.

    Rows do not need to be a multiple of 8 (that rule is on block_shape, and
    the partial last row-block is masked by Pallas), so only `n % lane == 0`
    is required.  The true-ragged fallback pads to a multiple of 128 only.
    """
    for lane in (1024, 512, 256, 128):
        if n % lane == 0:
            return lane, 0
    lane = 128
    return lane, (-n) % lane


def swish(x, beta, *, target_block_bytes=4 * 1024 * 1024, donate_x=False):
    """x: any-shape array (e.g. NCHW). beta: scalar parameter."""
    orig_shape = x.shape
    orig_dtype = x.dtype
    n = x.size
    itemsize = jnp.dtype(orig_dtype).itemsize

    lane, pad = _choose_layout(n)

    x_flat = jnp.ravel(x)
    if pad:
        x_flat = jnp.pad(x_flat, (0, pad))
    rows = (n + pad) // lane

    # Sub-32-bit dtypes pack 2 rows per sublane: align tiles to 16 rows for bf16/fp16.
    row_align = 16 if itemsize < 4 else 8

    # ~4 MiB blocks: amortize the ~0.35 us per-grid-step overhead (important on
    # v7x's 3.2 TB/s HBM); 4 blocks resident (double-buffered in + out) stays
    # well under scoped/physical VMEM on v5e/v6e/v7x.
    tile_rows = (target_block_bytes // (lane * itemsize)) // row_align * row_align
    tile_rows = max(row_align, tile_rows)
    tile_rows = min(tile_rows, rows)

    # v7x megacore: make sure medium/large tensors (>= 1 MiB) produce at least
    # two grid steps so the "parallel" axis can be sharded across both TCs.
    if tile_rows == rows and rows >= 2 * row_align and n * itemsize >= (1 << 20):
        tile_rows = (pl.cdiv(rows, 2) + row_align - 1) // row_align * row_align

    grid = (pl.cdiv(rows, tile_rows),)

    x2d = x_flat.reshape(rows, lane)
    beta_arr = jnp.asarray(beta, dtype=jnp.float32).reshape(1, 1)

    # VMEM limit from actual need: double-buffered input + output = 4 blocks,
    # plus margin; never below the conservative 16 MiB default.
    block_bytes = tile_rows * lane * itemsize
    vmem_limit = max(16 * 1024 * 1024, 4 * block_bytes + 2 * 1024 * 1024)

    cost = pl.CostEstimate(
        flops=5 * n,
        transcendentals=n,
        bytes_accessed=2 * n * itemsize,
    )

    # Output can reuse x's HBM buffer when the caller donates it (no-pad path only).
    io_aliases = {1: 0} if (donate_x and pad == 0) else {}

    out2d = pl.pallas_call(
        _swish_kernel,
        out_shape=jax.ShapeDtypeStruct((rows, lane), orig_dtype),
        grid=grid,
        in_specs=[
            pl.BlockSpec(memory_space=pltpu.SMEM),               # beta scalar
            pl.BlockSpec((tile_rows, lane), lambda i: (i, 0)),   # x tile
        ],
        out_specs=pl.BlockSpec((tile_rows, lane), lambda i: (i, 0)),
        compiler_params=pltpu.CompilerParams(
            dimension_semantics=("parallel",),
            vmem_limit_bytes=vmem_limit,
        ),
        cost_estimate=cost,
        input_output_aliases=io_aliases,
    )(beta_arr, x2d)

    if pad:
        return out2d.reshape(-1)[:n].reshape(orig_shape)
    return out2d.reshape(orig_shape)


if __name__ == "__main__":
    key = jax.random.PRNGKey(0)
    # Deterministic parameter init (matches nn.Parameter(torch.tensor(1.0))).
    beta = jnp.float32(1.0)

    # Small NCHW input consistent with typical conv-feature usage.
    x = jax.random.normal(key, (2, 4, 16, 16), dtype=jnp.float32)

    y = jax.block_until_ready(swish(x, beta))

    # Sanity check against pure-JAX reference.
    y_ref = x * jax.nn.sigmoid(beta * x)
    assert y.shape == x.shape and y.dtype == x.dtype
    assert jnp.allclose(y, y_ref, atol=1e-5, rtol=1e-5), "mismatch vs reference"

    print("KERNEL_OK")
</pallas_src>

<mosaic_0001>
module attributes {stable_mosaic.version = 11 : i64} {
  func.func @_swish_kernel(%arg0: i32, %arg1: memref<1x1xf32, #tpu.memory_space<smem>>, %arg2: memref<2x1024xf32, #tpu.memory_space<vmem>>, %arg3: memref<2x1024xf32, #tpu.memory_space<vmem>>) attributes {dimension_semantics = [#tpu.dimension_semantics<parallel>], iteration_bounds = array<i64: 1>, scalar_prefetch = 0 : i64, scratch_operands = 0 : i64, tpu.core_type = #tpu.core_type<tc>, window_params = [{transform_indices = @transform_0, window_bounds = array<i64: 1, 1>}, {transform_indices = @transform_1, window_bounds = array<i64: 2, 1024>}, {transform_indices = @transform_2, window_bounds = array<i64: 2, 1024>}]} {
    %c0 = arith.constant 0 : index
    %c0_0 = arith.constant 0 : index
    %0 = memref.load %arg1[%c0, %c0_0] : memref<1x1xf32, #tpu.memory_space<smem>>
    %c0_1 = arith.constant 0 : index
    %c0_2 = arith.constant 0 : index
    %1 = vector.load %arg2[%c0_1, %c0_2] : memref<2x1024xf32, #tpu.memory_space<vmem>>, vector<2x1024xf32>
    %2 = vector.broadcast %0 : f32 to vector<2x1024xf32>
    %3 = arith.mulf %2, %1 : vector<2x1024xf32>
    %cst = arith.constant 5.000000e-01 : f32
    %4 = vector.broadcast %cst : f32 to vector<2x1024xf32>
    %5 = arith.mulf %4, %3 : vector<2x1024xf32>
    %6 = math.tanh %5 : vector<2x1024xf32>
    %cst_3 = arith.constant 1.000000e+00 : f32
    %7 = vector.broadcast %cst_3 : f32 to vector<2x1024xf32>
    %8 = arith.addf %6, %7 : vector<2x1024xf32>
    %cst_4 = arith.constant 5.000000e-01 : f32
    %9 = vector.broadcast %cst_4 : f32 to vector<2x1024xf32>
    %10 = arith.mulf %9, %8 : vector<2x1024xf32>
    %11 = arith.mulf %1, %10 : vector<2x1024xf32>
    %c0_5 = arith.constant 0 : index
    %c0_6 = arith.constant 0 : index
    %12 = vector.load %arg3[%c0_5, %c0_6] : memref<2x1024xf32, #tpu.memory_space<vmem>>, vector<2x1024xf32>
    tpu.vector_store %arg3[%c0_5, %c0_6], %11 {strides = array<i32>} : memref<2x1024xf32, #tpu.memory_space<vmem>>, vector<2x1024xf32>,
    return
  }
  func.func @transform_0(%arg0: i32) -> (i32, i32) {
    %c0_i32 = arith.constant 0 : i32
    %c0_i32_0 = arith.constant 0 : i32
    %c0_i32_1 = arith.constant 0 : i32
    return %c0_i32, %c0_i32_0 : i32, i32
  }
  func.func @transform_1(%arg0: i32) -> (i32, i32) {
    %c0_i32 = arith.constant 0 : i32
    %c0_i32_0 = arith.constant 0 : i32
    return %arg0, %c0_i32 : i32, i32
  }
  func.func @transform_2(%arg0: i32) -> (i32, i32) {
    %c0_i32 = arith.constant 0 : i32
    %c0_i32_0 = arith.constant 0 : i32
    return %arg0, %c0_i32 : i32, i32
  }
}

</mosaic_0001>

<bundles_post_ra>
// kernel: tpu_custom_call.1
= control target key start
LH: loop header
LB: loop body
LE: loop exit
PB: predicated region body
PF: predicated region fallthrough
CT: control target
= control target key end

     0   :  { %8 = vsyncpa [#allocation4], 0  ;;  %s156_s0 = inlined_call_operand.<no memory space> [shape: f32[1,1], index: 0, kind: input, shape index: {}]   ;;  %s157_s1 = inlined_call_operand.hbm [shape: f32[2,1024], index: 1, kind: input, shape index: {}]   ;;  %s158_s2 = inlined_call_operand.hbm [shape: f32[2,1024], index: 2, kind: output, shape index: {}]  }
   0x1   :  { %9 = vsyncpa [#allocation5], 0  ;;  %s112_s9 = smov [#allocation3]   ;;  %s64_s13 = scalar_lea.hbm %s157_s1, 256 }
   0x2   :  { %s18_s10 = sshll.u32 %s112_s9, 4  ;;  %p65_p0 = scmp.ne.s32.totalorder %s157_s1, %s64_s13  ;;  %s19_s10 = int_to_ptr.vmem [resolvable:$true] %s18_s10 }
   0x3   :  { %p68_p1 = scmp.lt.u32.totalorder %s64_s13, %s157_s1 }
   0x5   :  { %p70_p2 = pnand %p68_p1, %p65_p0 }
   0x7   :  { %73 = shalt.err (!%p70_p2)
}
   0x8   :  { %s74_s18 = scalar_lea.vmem %s19_s10, 256  ;;  %p79_p4 = scmp.lt.s32.totalorder %s19_s10, %s19_s10 }
   0x9   :  { %p75_p3 = scmp.ne.s32.totalorder %s19_s10, %s74_s18  ;;  %p80_p5 = scmp.lt.s32.totalorder %s74_s18, %s74_s18 }
   0xb   :  { %p81_p6 = por %p80_p5, %p79_p4 }
   0xd   :  { %p82_p7 = pnand %p81_p6, %p75_p3 }
   0xf   :  { %85 = shalt.err (!%p82_p7)
}
  0x10   :  { %21 = dma.hbm_to_vmem [thread:$0]  %s157_s1, 256, %s19_s10, [#allocation4]  }
  0x11   :  { %108 = dma.done.wait [#allocation4], 256  }
  0x12   :  { %109 = vsyncadd [#allocation4], 4294967040  ;;  %v28_v0 = vstv %s156_s0  ;;  %v26_v1 = vld [vmem:[#allocation3] sm:$0xff]  ;;  %v27_v2 = vld [vmem:[#allocation3 + $0x8] sm:$0xff]  ;;  %s113_s1 = smov [#allocation6]  }
  0x13   :  { %v29_v3 = vmul.f32 %v28_v0, %v26_v1  ;;  %v30_v4 = vmul.f32 %v28_v0, %v27_v2  ;;  %s49_s23 = sshll.u32 %s113_s1, 4  ;;  %s50_s23 = int_to_ptr.vmem [resolvable:$true] %s49_s23 }
  0x14   :  { %s86_s0 = scalar_lea.vmem %s50_s23, 256  ;;  %p91_p9 = scmp.lt.s32.totalorder %s50_s23, %s50_s23 }
  0x15   :  { %v31_v5 = vmul.f32 0.5, %v29_v3  ;;  %v32_v6 = vmul.f32 0.5, %v30_v4  ;;  %p87_p8 = scmp.ne.s32.totalorder %s50_s23, %s86_s0  ;;  %p92_p10 = scmp.lt.s32.totalorder %s86_s0, %s86_s0 }
  0x17   :  { %60 = vtanh.f32 %v31_v5  ;;  %p93_p11 = por %p92_p10, %p91_p9 }
  0x18   :  { %62 = vtanh.f32 %v32_v6 }
  0x19   :  { %p94_p12 = pnand %p93_p11, %p87_p8 }
  0x21   :  { %v61_v7 = vpop.eup %60 }
  0x22   :  { %v63_v8 = vpop.eup %62  ;;  %v35_v9 = vadd.f32 1.0, %v61_v7 }
  0x23   :  { %v36_v10 = vadd.f32 1.0, %v63_v8 }
  0x24   :  { %v37_v11 = vmul.f32 0.5, %v35_v9 }
  0x25   :  { %v38_v12 = vmul.f32 0.5, %v36_v10 }
  0x26   :  { %v39_v13 = vmul.f32 %v37_v11, %v26_v1 }
  0x27   :  { %v40_v14 = vmul.f32 %v38_v12, %v27_v2 }
  0x28   :  { %41 = vst [vmem:[#allocation6] sm:$0xff] %v39_v13 }
  0x29   :  { %42 = vst [vmem:[#allocation6 + $0x8] sm:$0xff] %v40_v14 }
  0x2a   :  { %97 = shalt.err (!%p94_p12)
}
  0x2b   :  { %s98_s26 = scalar_lea.hbm %s158_s2, 256 }
  0x2c   :  { %p99_p13 = scmp.ne.s32.totalorder %s158_s2, %s98_s26  ;;  %p102_p0 = scmp.lt.u32.totalorder %s98_s26, %s158_s2 }
  0x2e   :  { %p104_p1 = pnand %p102_p0, %p99_p13 }
  0x30   :  { %107 = shalt.err (!%p104_p1)
}
  0x31   :  { %52 = dma.vmem_to_hbm [thread:$0]  %s50_s23, 256, %s158_s2, [#allocation5]  }
  0x32   :  { %110 = dma.done.wait [#allocation5], 256  }
  0x33   :  { %111 = vsyncadd [#allocation5], 4294967040 }
  0x34   :  { %56 = vsyncpa [#allocation4], 1 }
  0x35   :  { %57 = vsyncpa [#allocation5], 1 }

</bundles_post_ra>
